<compile_context>
chip_gen: v7x
topology: tpu7x:2x2x1
jax: 0.10.0
libtpu: 0.0.40
codegen_flags: <defaults>
</compile_context>

<pallas_src>
import numpy as np
import jax
import jax.numpy as jnp
from jax.experimental import pallas as pl
from jax.experimental.pallas import tpu as pltpu


# ----------------------------------------------------------------------------
# Operator-matrix construction (glue, plain JAX)
# ----------------------------------------------------------------------------
def adaptive_pool_matrix(out_size, in_size):
    """A[i, h] such that (A @ v) == AdaptiveAvgPool1d(out_size)(v) (PyTorch rule)."""
    i = jnp.arange(out_size)
    start = (i * in_size) // out_size
    end = ((i + 1) * in_size + out_size - 1) // out_size  # ceil
    pos = jnp.arange(in_size)
    mask = (pos[None, :] >= start[:, None]) & (pos[None, :] < end[:, None])
    counts = (end - start).astype(jnp.float32)
    return mask.astype(jnp.float32) / counts[:, None]


def bilinear_matrix(out_size, in_size):
    """B[o, i] for 1-D linear interpolation, align_corners=True (PyTorch rule)."""
    if in_size == 1:
        return jnp.ones((out_size, 1), jnp.float32)
    if out_size == 1:
        return jnp.zeros((1, in_size), jnp.float32).at[0, 0].set(1.0)
    o = jnp.arange(out_size, dtype=jnp.float32)
    src = o * (in_size - 1) / (out_size - 1)
    i0 = jnp.clip(jnp.floor(src).astype(jnp.int32), 0, in_size - 2)
    frac = src - i0.astype(jnp.float32)
    rows = jnp.arange(out_size)
    m = jnp.zeros((out_size, in_size), jnp.float32)
    m = m.at[rows, i0].add(1.0 - frac)
    m = m.at[rows, i0 + 1].add(frac)
    return m


def _round_up(a, m):
    return (a + m - 1) // m * m


# ----------------------------------------------------------------------------
# Tile / VMEM-budget selection (per-chip: v5e/v6e 128 MiB, v7x 64 MiB)
# ----------------------------------------------------------------------------
def _pick_tile_and_vmem(hw, c, bbp, rtot_split):
    try:
        vmem_cap = int(pltpu.get_tpu_info().vmem_capacity_bytes)
    except Exception:
        vmem_cap = 64 * 1024 * 1024  # conservative (v7x-sized) fallback
    vmem_limit = min(vmem_cap, 128 * 1024 * 1024) - 24 * 1024 * 1024
    budget = vmem_limit - 6 * 1024 * 1024  # headroom for compiler scratch

    hw128 = _round_up(hw, 128)
    candidates = [t for t in (2048, 1024, 512, 256, 128) if t <= hw128]
    tile = candidates[-1]
    for t in candidates:  # largest first
        hwp = _round_up(hw, t)
        resident = 2 * (2 * bbp * hwp)                              # P + U, bf16, 1-buf
        consts = 2 * c * rtot_split + 2 * bbp * rtot_split          # w + mask, bf16, 1-buf
        scratch = 4 * bbp * c + 2 * bbp * rtot_split                # pooled f32 + ydiag bf16
        streamed = 2 * (2 * t * c) + 2 * (2 * t * rtot_split)       # x + out, bf16, 2-buf
        if resident + consts + scratch + streamed <= budget:
            tile = t
            break
    return tile, vmem_limit


# ----------------------------------------------------------------------------
# Fused Pallas kernel: pool (accumulated) -> masked conv+ReLU -> upsample emit
# ----------------------------------------------------------------------------
def _make_ppm_kernel(k_steps):
    def kernel(x_ref, p_ref, u_ref, w_ref, m_ref, o_ref, pooled_scr, ydiag_scr):
        phase = pl.program_id(2)
        k = pl.program_id(3)

        # phase 0: stream x tiles once, accumulate pooled = P_all @ X (f32).
        @pl.when(jnp.logical_and(phase == 0, k == 0))
        def _init():
            pooled_scr[...] = jnp.zeros_like(pooled_scr)

        @pl.when(phase == 0)
        def _pool():
            pooled_scr[...] += jnp.dot(p_ref[k], x_ref[...],
                                       preferred_element_type=jnp.float32)

        # end of phase 0: fused 1x1 conv + ReLU -> block-diagonal Ydiag.
        # hi/lo bf16 split of the f32 pooled accumulator keeps near-f32
        # accuracy on the MXU without materializing an f32 copy of W.
        @pl.when(jnp.logical_and(phase == 0, k == k_steps - 1))
        def _conv_relu():
            pooled = pooled_scr[...]
            hi = pooled.astype(jnp.bfloat16)
            lo = (pooled - hi.astype(jnp.float32)).astype(jnp.bfloat16)
            z = (jnp.dot(hi, w_ref[...], preferred_element_type=jnp.float32)
                 + jnp.dot(lo, w_ref[...], preferred_element_type=jnp.float32))
            ydiag_scr[...] = (jnp.maximum(z, 0.0)
                              * m_ref[...].astype(jnp.float32)).astype(ydiag_scr.dtype)

        # phase 1: emit lane-dense upsampled output (bf16), one HW tile per step.
        @pl.when(phase == 1)
        def _emit():
            o_ref[...] = jnp.dot(u_ref[k], ydiag_scr[...],
                                 preferred_element_type=jnp.float32).astype(o_ref.dtype)

    return kernel


def _ppm_branches_fused(x_tok, p_tiles, u_tiles, w_cat, mask, tile, col_splits,
                        vmem_limit):
    n, hwp, c = x_tok.shape
    k_steps, bbp, _ = p_tiles.shape
    rtot_p = w_cat.shape[1]
    rsplit = rtot_p // col_splits

    # x is re-fetched only in phase 0 (frozen block index in phase 1); the
    # output block only advances in phase 1, so each HBM tile moves once per
    # (batch, col split).
    def x_map(i, cs, ph, k):
        return (i, jnp.where(ph == 0, k, k_steps - 1), 0)

    def o_map(i, cs, ph, k):
        return (i, jnp.where(ph == 1, k, 0), cs)

    const3 = lambda i, cs, ph, k: (0, 0, 0)     # VMEM-resident P / U tiles
    wm_map = lambda i, cs, ph, k: (0, cs)       # per-column-split W / mask

    return pl.pallas_call(
        _make_ppm_kernel(k_steps),
        out_shape=jax.ShapeDtypeStruct((n, hwp, rtot_p), jnp.bfloat16),
        grid_spec=pltpu.PrefetchScalarGridSpec(
            num_scalar_prefetch=0,
            grid=(n, col_splits, 2, k_steps),
            in_specs=[
                pl.BlockSpec((None, tile, c), x_map),                   # x tokens (bf16)
                pl.BlockSpec((k_steps, bbp, tile), const3,
                             pipeline_mode=pl.Buffered(1)),             # pooling operator
                pl.BlockSpec((k_steps, tile, bbp), const3,
                             pipeline_mode=pl.Buffered(1)),             # upsample operator
                pl.BlockSpec((c, rsplit), wm_map,
                             pipeline_mode=pl.Buffered(1)),             # stacked 1x1 conv
                pl.BlockSpec((bbp, rsplit), wm_map,
                             pipeline_mode=pl.Buffered(1)),             # block mask
            ],
            out_specs=pl.BlockSpec((None, tile, rsplit), o_map),
            scratch_shapes=[
                pltpu.VMEM((bbp, c), jnp.float32),        # pooled accumulator
                pltpu.VMEM((bbp, rsplit), jnp.bfloat16),  # block-diagonal conv output
            ],
        ),
        compiler_params=pltpu.CompilerParams(
            dimension_semantics=("parallel", "parallel", "arbitrary", "arbitrary"),
            vmem_limit_bytes=vmem_limit,
        ),
    )(x_tok, p_tiles, u_tiles, w_cat, mask)


# ----------------------------------------------------------------------------
# Full PPM forward (wrapper)
# ----------------------------------------------------------------------------
def ppm_forward(x_nchw, conv_weights, bins, *, col_splits=1, layout="NCHW"):
    """x_nchw: (N, C, H, W) f32. conv_weights: list of (R, C, 1, 1).

    col_splits=2 is meant for v7x (2 TensorCores) when N==1: it splits the
    output columns across a second 'parallel' grid axis.  layout="NHWC" lets a
    consumer skip the transpose-back + NCHW concat HBM passes.
    """
    n, c, h, w = x_nchw.shape
    hw = h * w
    r = conv_weights[0].shape[0]
    rtot = r * len(bins)

    # Lane-dense output: pad Rtot up to a multiple of 128 (zero weight columns
    # produce exact zeros that are sliced off below).
    rtot_p = max(_round_up(rtot, 128), 128)
    if col_splits < 1 or rtot_p % (col_splits * 128) != 0:
        col_splits = 1

    # Stack per-branch operators unpadded; pad only the total pooled-row count.
    total_rows = sum(b * b for b in bins)
    bbp = _round_up(total_rows, 16)
    p_blocks, u_blocks = [], []
    mask = jnp.zeros((bbp, rtot_p), jnp.float32)
    row_off = 0
    for bi, b in enumerate(bins):
        ah = adaptive_pool_matrix(b, h)
        aw = adaptive_pool_matrix(b, w)
        bh = bilinear_matrix(h, b)
        bw = bilinear_matrix(w, b)
        p_blocks.append(jnp.einsum('ih,jw->ijhw', ah, aw).reshape(b * b, hw))
        u_blocks.append(jnp.einsum('hi,wj->hwij', bh, bw).reshape(hw, b * b))
        mask = mask.at[row_off:row_off + b * b, bi * r:(bi + 1) * r].set(1.0)
        row_off += b * b
    p_all = jnp.pad(jnp.concatenate(p_blocks, 0), ((0, bbp - total_rows), (0, 0)))
    u_cat = jnp.pad(jnp.concatenate(u_blocks, 1), ((0, 0), (0, bbp - total_rows)))
    w_cat = jnp.concatenate([w4[:, :, 0, 0].T for w4 in conv_weights], axis=1)
    w_cat = jnp.pad(w_cat, ((0, 0), (0, rtot_p - rtot)))                 # (C, Rtot_p)

    # HW tiling sized from the chip's VMEM capacity.
    tile, vmem_limit = _pick_tile_and_vmem(hw, c, bbp, rtot_p // col_splits)
    hwp = _round_up(hw, tile)
    k_steps = hwp // tile

    # Token layout; bf16 cast fused into the same transpose/copy.
    x_tok = jnp.transpose(x_nchw, (0, 2, 3, 1)).reshape(n, hw, c).astype(jnp.bfloat16)
    if hwp != hw:
        x_tok = jnp.pad(x_tok, ((0, 0), (0, hwp - hw), (0, 0)))
        p_all = jnp.pad(p_all, ((0, 0), (0, hwp - hw)))
        u_cat = jnp.pad(u_cat, ((0, hwp - hw), (0, 0)))

    # Pre-split P / U into HW tiles so the kernel indexes them with ref[k];
    # they stay VMEM-resident and are DMA'd exactly once per pallas_call.
    p_tiles = p_all.reshape(bbp, k_steps, tile).transpose(1, 0, 2).astype(jnp.bfloat16)
    u_tiles = u_cat.reshape(k_steps, tile, bbp).astype(jnp.bfloat16)

    out_tok = _ppm_branches_fused(x_tok, p_tiles, u_tiles,
                                  w_cat.astype(jnp.bfloat16),
                                  mask.astype(jnp.bfloat16),
                                  tile, col_splits, vmem_limit)

    branches_tok = out_tok[:, :hw, :rtot].astype(jnp.float32)
    if layout == "NHWC":
        # TODO(synk): a consumer accepting token/NHWC layout (and bf16) could
        # read [x | out_tok] directly and skip even this concat.
        x_nhwc = jnp.transpose(x_nchw, (0, 2, 3, 1))
        return jnp.concatenate([x_nhwc, branches_tok.reshape(n, h, w, rtot)], axis=-1)
    branches = branches_tok.reshape(n, h, w, rtot).transpose(0, 3, 1, 2)
    return jnp.concatenate([x_nchw, branches], axis=1)


# ----------------------------------------------------------------------------
# Pure-JAX reference (f32) for verification
# ----------------------------------------------------------------------------
def ppm_reference(x, conv_weights, bins):
    outs = [x]
    _, _, h, w = x.shape
    for b, w4 in zip(bins, conv_weights):
        ah = adaptive_pool_matrix(b, h)
        aw = adaptive_pool_matrix(b, w)
        bh = bilinear_matrix(h, b)
        bw = bilinear_matrix(w, b)
        wm = w4[:, :, 0, 0]
        pooled = jnp.einsum('nchw,ih,jw->ncij', x, ah, aw)
        y = jnp.maximum(jnp.einsum('rc,ncij->nrij', wm, pooled), 0.0)
        outs.append(jnp.einsum('nrij,hi,wj->nrhw', y, bh, bw))
    return jnp.concatenate(outs, axis=1)


if __name__ == "__main__":
    bins = (1, 2, 3, 6)
    fwd = jax.jit(ppm_forward, static_argnames=("bins", "col_splits", "layout"))

    # --- Test 1: PPM(in_dim=4, reduction_dim=8, bins) on x (2, 4, 16, 16) ----
    N, C, H, W, R = 2, 4, 16, 16, 8
    key = jax.random.PRNGKey(0)
    kx, kw = jax.random.split(key)
    x = jax.random.normal(kx, (N, C, H, W), dtype=jnp.float32)
    wkeys = jax.random.split(kw, len(bins))
    conv_weights = [(jax.random.normal(k, (R, C, 1, 1), jnp.float32) / np.sqrt(C))
                    for k in wkeys]

    out = jax.block_until_ready(fwd(x, conv_weights, bins=bins))
    assert out.shape == (N, C + len(bins) * R, H, W), out.shape
    ref = jax.block_until_ready(ppm_reference(x, conv_weights, bins))
    # bf16 kernel inputs/output (f32 MXU accumulation) vs f32 reference.
    np.testing.assert_allclose(np.asarray(out), np.asarray(ref), rtol=2e-2, atol=2e-2)

    # NHWC output layout (skips the transpose-back wrapper pass).
    out_nhwc = jax.block_until_ready(fwd(x, conv_weights, bins=bins, layout="NHWC"))
    np.testing.assert_allclose(np.asarray(out_nhwc.transpose(0, 3, 1, 2)),
                               np.asarray(ref), rtol=2e-2, atol=2e-2)

    # --- Test 2: N=1 with col_splits=2 (v7x dual-TensorCore path) ------------
    N2, R2 = 1, 64
    kx2, kw2 = jax.random.split(jax.random.PRNGKey(1))
    x2 = jax.random.normal(kx2, (N2, C, H, W), dtype=jnp.float32)
    wkeys2 = jax.random.split(kw2, len(bins))
    conv_weights2 = [(jax.random.normal(k, (R2, C, 1, 1), jnp.float32) / np.sqrt(C))
                     for k in wkeys2]
    out2 = jax.block_until_ready(fwd(x2, conv_weights2, bins=bins, col_splits=2))
    assert out2.shape == (N2, C + len(bins) * R2, H, W), out2.shape
    ref2 = jax.block_until_ready(ppm_reference(x2, conv_weights2, bins))
    np.testing.assert_allclose(np.asarray(out2), np.asarray(ref2), rtol=2e-2, atol=2e-2)

    print("KERNEL_OK")
</pallas_src>

<mosaic_0001>
module attributes {stable_mosaic.version = 11 : i64} {
  func.func private @main(%arg0: i32) attributes {dimension_semantics = [#tpu.dimension_semantics<core_parallel>], iteration_bounds = array<i64: 2>, tpu.core_type = #tpu.core_type<sc_scalar_subcore>, window_params = []} {
    return
  }
}

module attributes {stable_mosaic.version = 11 : i64} {
  func.func private @main(%arg0: i32) attributes {dimension_semantics = [#tpu.dimension_semantics<core_parallel>], iteration_bounds = array<i64: 2>, tpu.core_type = #tpu.core_type<sc_scalar_subcore>, window_params = []} {
    return
  }
}

module attributes {stable_mosaic.version = 11 : i64} {
  func.func @kernel(%arg0: i32, %arg1: i32, %arg2: i32, %arg3: i32, %arg4: memref<1x256x4xbf16, #tpu.memory_space<vmem>>, %arg5: memref<1x64x256xbf16, #tpu.memory_space<vmem>>, %arg6: memref<1x256x64xbf16, #tpu.memory_space<vmem>>, %arg7: memref<4x128xbf16, #tpu.memory_space<vmem>>, %arg8: memref<64x128xbf16, #tpu.memory_space<vmem>>, %arg9: memref<1x256x128xbf16, #tpu.memory_space<vmem>>, %arg10: memref<64x4xf32, #tpu.memory_space<vmem>>, %arg11: memref<64x128xbf16, #tpu.memory_space<vmem>>) attributes {dimension_semantics = [#tpu.dimension_semantics<parallel>, #tpu.dimension_semantics<parallel>, #tpu.dimension_semantics<arbitrary>, #tpu.dimension_semantics<arbitrary>], iteration_bounds = array<i64: 2, 1, 2, 1>, scalar_prefetch = 0 : i64, scratch_operands = 2 : i64, tpu.core_type = #tpu.core_type<tc>, window_params = [{transform_indices = @transform_0, window_bounds = array<i64: 1, 256, 4>}, {pipeline_mode = #tpu.pipeline_mode<synchronous>, transform_indices = @transform_1, window_bounds = array<i64: 1, 64, 256>}, {pipeline_mode = #tpu.pipeline_mode<synchronous>, transform_indices = @transform_2, window_bounds = array<i64: 1, 256, 64>}, {pipeline_mode = #tpu.pipeline_mode<synchronous>, transform_indices = @transform_3, window_bounds = array<i64: 4, 128>}, {pipeline_mode = #tpu.pipeline_mode<synchronous>, transform_indices = @transform_4, window_bounds = array<i64: 64, 128>}, {transform_indices = @transform_5, window_bounds = array<i64: 1, 256, 128>}]} {
    %c0_i32 = arith.constant 0 : i32
    %0 = arith.cmpi eq, %arg2, %c0_i32 : i32
    %c0_i32_0 = arith.constant 0 : i32
    %1 = arith.cmpi eq, %arg3, %c0_i32_0 : i32
    %2 = arith.andi %0, %1 : i1
    %3 = arith.extui %2 : i1 to i32
    %c0_i32_1 = arith.constant 0 : i32
    %4 = arith.cmpi ne, %3, %c0_i32_1 : i32
    scf.if %4 {
      %cst = arith.constant 0.000000e+00 : f32
      %16 = vector.broadcast %cst : f32 to vector<64x4xf32>
      %c0 = arith.constant 0 : index
      %c0_8 = arith.constant 0 : index
      %17 = vector.load %arg10[%c0, %c0_8] : memref<64x4xf32, #tpu.memory_space<vmem>>, vector<64x4xf32>
      tpu.vector_store %arg10[%c0, %c0_8], %16 {strides = array<i32>} : memref<64x4xf32, #tpu.memory_space<vmem>>, vector<64x4xf32>,
    } else {
    }
    %c0_i32_2 = arith.constant 0 : i32
    %5 = arith.cmpi eq, %arg2, %c0_i32_2 : i32
    %6 = arith.extui %5 : i1 to i32
    %c0_i32_3 = arith.constant 0 : i32
    %7 = arith.cmpi ne, %6, %c0_i32_3 : i32
    scf.if %7 {
      %c0 = arith.constant 0 : index
      %c0_8 = arith.constant 0 : index
      %16 = vector.load %arg10[%c0, %c0_8] : memref<64x4xf32, #tpu.memory_space<vmem>>, vector<64x4xf32>
      %17 = arith.index_cast %arg3 : i32 to index
      %c0_9 = arith.constant 0 : index
      %c0_10 = arith.constant 0 : index
      %18 = vector.load %arg5[%17, %c0_9, %c0_10] : memref<1x64x256xbf16, #tpu.memory_space<vmem>>, vector<1x64x256xbf16>
      %19 = vector.shape_cast %18 : vector<1x64x256xbf16> to vector<64x256xbf16>
      %c0_11 = arith.constant 0 : index
      %c0_12 = arith.constant 0 : index
      %c0_13 = arith.constant 0 : index
      %20 = vector.load %arg4[%c0_11, %c0_12, %c0_13] : memref<1x256x4xbf16, #tpu.memory_space<vmem>>, vector<1x256x4xbf16>
      %21 = vector.shape_cast %20 : vector<1x256x4xbf16> to vector<256x4xbf16>
      %cst = arith.constant dense<0.000000e+00> : vector<64x4xf32>
      %22 = tpu.matmul %19, %21, %cst {dimension_numbers = #tpu.dot_dimension_numbers<[1], [0], [0], [1], [0, 0, 1, 1], [], []>} : vector<64x256xbf16>, vector<256x4xbf16>, vector<64x4xf32> -> vector<64x4xf32>
      %23 = arith.addf %16, %22 : vector<64x4xf32>
      %c0_14 = arith.constant 0 : index
      %c0_15 = arith.constant 0 : index
      %24 = vector.load %arg10[%c0_14, %c0_15] : memref<64x4xf32, #tpu.memory_space<vmem>>, vector<64x4xf32>
      tpu.vector_store %arg10[%c0_14, %c0_15], %23 {strides = array<i32>} : memref<64x4xf32, #tpu.memory_space<vmem>>, vector<64x4xf32>,
    } else {
    }
    %c0_i32_4 = arith.constant 0 : i32
    %8 = arith.cmpi eq, %arg2, %c0_i32_4 : i32
    %c0_i32_5 = arith.constant 0 : i32
    %9 = arith.cmpi eq, %arg3, %c0_i32_5 : i32
    %10 = arith.andi %8, %9 : i1
    %11 = arith.extui %10 : i1 to i32
    %c0_i32_6 = arith.constant 0 : i32
    %12 = arith.cmpi ne, %11, %c0_i32_6 : i32
    scf.if %12 {
      %c0 = arith.constant 0 : index
      %c0_8 = arith.constant 0 : index
      %16 = vector.load %arg10[%c0, %c0_8] : memref<64x4xf32, #tpu.memory_space<vmem>>, vector<64x4xf32>
      %17 = arith.truncf %16 : vector<64x4xf32> to vector<64x4xbf16>
      %18 = arith.extf %17 : vector<64x4xbf16> to vector<64x4xf32>
      %19 = arith.subf %16, %18 : vector<64x4xf32>
      %20 = arith.truncf %19 : vector<64x4xf32> to vector<64x4xbf16>
      %c0_9 = arith.constant 0 : index
      %c0_10 = arith.constant 0 : index
      %21 = vector.load %arg7[%c0_9, %c0_10] : memref<4x128xbf16, #tpu.memory_space<vmem>>, vector<4x128xbf16>
      %cst = arith.constant dense<0.000000e+00> : vector<64x128xf32>
      %22 = tpu.matmul %17, %21, %cst {dimension_numbers = #tpu.dot_dimension_numbers<[1], [0], [0], [1], [0, 0, 1, 1], [], []>} : vector<64x4xbf16>, vector<4x128xbf16>, vector<64x128xf32> -> vector<64x128xf32>
      %c0_11 = arith.constant 0 : index
      %c0_12 = arith.constant 0 : index
      %23 = vector.load %arg7[%c0_11, %c0_12] : memref<4x128xbf16, #tpu.memory_space<vmem>>, vector<4x128xbf16>
      %cst_13 = arith.constant dense<0.000000e+00> : vector<64x128xf32>
      %24 = tpu.matmul %20, %23, %cst_13 {dimension_numbers = #tpu.dot_dimension_numbers<[1], [0], [0], [1], [0, 0, 1, 1], [], []>} : vector<64x4xbf16>, vector<4x128xbf16>, vector<64x128xf32> -> vector<64x128xf32>
      %25 = arith.addf %22, %24 : vector<64x128xf32>
      %cst_14 = arith.constant 0.000000e+00 : f32
      %26 = vector.broadcast %cst_14 : f32 to vector<64x128xf32>
      %27 = arith.maximumf %25, %26 : vector<64x128xf32>
      %c0_15 = arith.constant 0 : index
      %c0_16 = arith.constant 0 : index
      %28 = vector.load %arg8[%c0_15, %c0_16] : memref<64x128xbf16, #tpu.memory_space<vmem>>, vector<64x128xbf16>
      %29 = arith.extf %28 : vector<64x128xbf16> to vector<64x128xf32>
      %30 = arith.mulf %27, %29 : vector<64x128xf32>
      %31 = arith.truncf %30 : vector<64x128xf32> to vector<64x128xbf16>
      %c0_17 = arith.constant 0 : index
      %c0_18 = arith.constant 0 : index
      %32 = vector.load %arg11[%c0_17, %c0_18] : memref<64x128xbf16, #tpu.memory_space<vmem>>, vector<64x128xbf16>
      tpu.vector_store %arg11[%c0_17, %c0_18], %31 {strides = array<i32>} : memref<64x128xbf16, #tpu.memory_space<vmem>>, vector<64x128xbf16>,
    } else {
    }
    %c1_i32 = arith.constant 1 : i32
    %13 = arith.cmpi eq, %arg2, %c1_i32 : i32
    %14 = arith.extui %13 : i1 to i32
    %c0_i32_7 = arith.constant 0 : i32
    %15 = arith.cmpi ne, %14, %c0_i32_7 : i32
    scf.if %15 {
      %16 = arith.index_cast %arg3 : i32 to index
      %c0 = arith.constant 0 : index
      %c0_8 = arith.constant 0 : index
      %17 = vector.load %arg6[%16, %c0, %c0_8] : memref<1x256x64xbf16, #tpu.memory_space<vmem>>, vector<1x256x64xbf16>
      %18 = vector.shape_cast %17 : vector<1x256x64xbf16> to vector<256x64xbf16>
      %c0_9 = arith.constant 0 : index
      %c0_10 = arith.constant 0 : index
      %19 = vector.load %arg11[%c0_9, %c0_10] : memref<64x128xbf16, #tpu.memory_space<vmem>>, vector<64x128xbf16>
      %cst = arith.constant dense<0.000000e+00> : vector<256x128xf32>
      %20 = tpu.matmul %18, %19, %cst {dimension_numbers = #tpu.dot_dimension_numbers<[1], [0], [0], [1], [0, 0, 1, 1], [], []>} : vector<256x64xbf16>, vector<64x128xbf16>, vector<256x128xf32> -> vector<256x128xf32>
      %21 = arith.truncf %20 : vector<256x128xf32> to vector<256x128xbf16>
      %c0_11 = arith.constant 0 : index
      %c0_12 = arith.constant 0 : index
      %c0_13 = arith.constant 0 : index
      %22 = vector.load %arg9[%c0_11, %c0_12, %c0_13] : memref<1x256x128xbf16, #tpu.memory_space<vmem>>, vector<1x256x128xbf16>
      %23 = vector.shape_cast %22 : vector<1x256x128xbf16> to vector<256x128xbf16>
      %24 = vector.shape_cast %21 : vector<256x128xbf16> to vector<1x256x128xbf16>
      tpu.vector_store %arg9[%c0_11, %c0_12, %c0_13], %24 {strides = array<i32>} : memref<1x256x128xbf16, #tpu.memory_space<vmem>>, vector<1x256x128xbf16>,
    } else {
    }
    return
  }
  func.func @transform_0(%arg0: i32, %arg1: i32, %arg2: i32, %arg3: i32) -> (i32, i32, i32) {
    %c0_i32 = arith.constant 0 : i32
    %0 = arith.cmpi eq, %arg2, %c0_i32 : i32
    %c0_i32_0 = arith.constant 0 : i32
    %1 = arith.select %0, %arg3, %c0_i32_0 : i32
    %c0_i32_1 = arith.constant 0 : i32
    %c0_i32_2 = arith.constant 0 : i32
    return %arg0, %1, %c0_i32_1 : i32, i32, i32
  }
  func.func @transform_1(%arg0: i32, %arg1: i32, %arg2: i32, %arg3: i32) -> (i32, i32, i32) {
    %c0_i32 = arith.constant 0 : i32
    %c0_i32_0 = arith.constant 0 : i32
    %c0_i32_1 = arith.constant 0 : i32
    %c0_i32_2 = arith.constant 0 : i32
    return %c0_i32, %c0_i32_0, %c0_i32_1 : i32, i32, i32
  }
  func.func @transform_2(%arg0: i32, %arg1: i32, %arg2: i32, %arg3: i32) -> (i32, i32, i32) {
    %c0_i32 = arith.constant 0 : i32
    %c0_i32_0 = arith.constant 0 : i32
    %c0_i32_1 = arith.constant 0 : i32
    %c0_i32_2 = arith.constant 0 : i32
    return %c0_i32, %c0_i32_0, %c0_i32_1 : i32, i32, i32
  }
  func.func @transform_3(%arg0: i32, %arg1: i32, %arg2: i32, %arg3: i32) -> (i32, i32) {
    %c0_i32 = arith.constant 0 : i32
    %c0_i32_0 = arith.constant 0 : i32
    return %c0_i32, %arg1 : i32, i32
  }
  func.func @transform_4(%arg0: i32, %arg1: i32, %arg2: i32, %arg3: i32) -> (i32, i32) {
    %c0_i32 = arith.constant 0 : i32
    %c0_i32_0 = arith.constant 0 : i32
    return %c0_i32, %arg1 : i32, i32
  }
  func.func @transform_5(%arg0: i32, %arg1: i32, %arg2: i32, %arg3: i32) -> (i32, i32, i32) {
    %c1_i32 = arith.constant 1 : i32
    %0 = arith.cmpi eq, %arg2, %c1_i32 : i32
    %c0_i32 = arith.constant 0 : i32
    %1 = arith.select %0, %arg3, %c0_i32 : i32
    %c0_i32_0 = arith.constant 0 : i32
    return %arg0, %1, %arg1 : i32, i32, i32
  }
}

</mosaic_0001>

<bundles_post_ra>
// kernel: ppm_forward.1
= control target key start
LH: loop header
LB: loop body
LE: loop exit
PB: predicated region body
PF: predicated region fallthrough
CT: control target
= control target key end

     0   :  { %s2086_s18 = smov 0   ;;  %s2088_s19 = smov 0   ;;  %s2301_s0 = inlined_call_operand.vmem [shape: bf16[2,256,4], index: 0, kind: input, shape index: {}]   ;;  %s2302_s1 = inlined_call_operand.vmem [shape: bf16[1,64,256], index: 1, kind: input, shape index: {}]   ;;  %s2303_s2 = inlined_call_operand.vmem [shape: bf16[1,256,64], index: 2, kind: input, shape index: {}]   ;;  %s2304_s3 = inlined_call_operand.vmem [shape: bf16[4,128], index: 3, kind: input, shape index: {}]   ;;  %s2305_s4 = inlined_call_operand.vmem [shape: bf16[64,128], index: 4, kind: input, shape index: {}]   ;;  %s2306_s5 = inlined_call_operand.vmem [shape: bf16[2,256,128], index: 5, kind: output, shape index: {}]  }
   0x1   :  { %s2090_s20 = smov 0   ;;  %s2092_s21 = smov 0  }
   0x2   :  { %s2094_s22 = smov 0  }
   0x3 LB: > { %s33_s23 = sadd.s32 1, %s2045_s20  ;;  %s41_s24 = sadd.s32 1, %s2049_s21  ;;  %s2053_s22 = sphi %s2094_s22, %s15_s22   ;;  %s2049_s21 = sphi %s2092_s21, %s2310_s21   ;;  %s2045_s20 = sphi %s2090_s20, %s2309_s20   ;;  %s2041_s19 = sphi %s2088_s19, %s2308_s19   ;;  %s2037_s18 = sphi %s2086_s18, %s2307_s18  }
   0x4   : > { %p35_p0 = scmp.ge.s32.totalorder %s33_s23, 2  ;;  %p1511_p1 = scmp.ge.s32.totalorder %s2053_s22, 1 }
   0x5   : > { %p254_p2 = scmp.lt.s32.totalorder %s2053_s22, 5 }
   0x6   : > { %s2312_s23 = smov (%p35_p0, %s33_s23), 0  ;;  %s2314_s24 = smov (!%p35_p0, %s41_s24), %s2049_s21 }
   0x7   : > { %p255_p3 = pnand %p1511_p1, %p254_p2  ;;  %p43_p4 = scmp.ge.s32.totalorder %s2314_s24, 2 }
   0x8   : > { %p308_p5 = scmp.lt.s32.totalorder (!%p255_p3), %s2041_s19, 1  ;;  %p345_p6 = scmp.eq.s32.totalorder (!%p255_p3), %s2037_s18, 0 }
   0x9   : > { %s2316_s24 = smov (%p43_p4, %s2314_s24), 0  ;;  %258 = sbr.rel (%p255_p3) target bundleno = 792 (0x318), region = 40 }
  0x10   : > { %s2318_s19 = smov (!%p308_p5, %s2041_s19), 1  ;;  %350 = sbr.rel (!%p345_p6) target bundleno = 23 (0x17), region = 44 }
  0x11   : > { %s1617_s25 = sshll.u32 %s2318_s19, 7  ;;  %vm351_vm0 = vcmask (%p345_p6), 31744   ;;  %v2055_v0 = vmov (%p345_p6), 0.0  }
  0x12   : > { %s2122_s28 = scalar_lea.vmem %s2301_s0, %s1617_s25  ;;  %s2127_s6 = scalar_lea.vmem %s2306_s5, %s1617_s25  ;;  %352 = vst.msk [vmem:[#allocation2] sm:$0xff] (%p345_p6), %vm351_vm0, %v2055_v0  ;;  %353 = vst.msk [vmem:[#allocation2 + $0x8] sm:$0xff] (%p345_p6), %vm351_vm0, %v2055_v0 }
  0x13   : > { %354 = vst.msk [vmem:[#allocation2 + $0x10] sm:$0xff] (%p345_p6), %vm351_vm0, %v2055_v0  ;;  %355 = vst.msk [vmem:[#allocation2 + $0x18] sm:$0xff] (%p345_p6), %vm351_vm0, %v2055_v0 }
  0x14   : > { %356 = vst.msk [vmem:[#allocation2 + $0x20] sm:$0xff] (%p345_p6), %vm351_vm0, %v2055_v0  ;;  %357 = vst.msk [vmem:[#allocation2 + $0x28] sm:$0xff] (%p345_p6), %vm351_vm0, %v2055_v0 }
  0x15   : > { %358 = vst.msk [vmem:[#allocation2 + $0x30] sm:$0xff] (%p345_p6), %vm351_vm0, %v2055_v0  ;;  %359 = vst.msk [vmem:[#allocation2 + $0x38] sm:$0xff] (%p345_p6), %vm351_vm0, %v2055_v0 }
  0x17 PF: > { %p1517_p7 = scmp.ne.s32.totalorder %s2037_s18, 0 }
  0x18   : > { %v1971_v1 = vld [vmem:[%s2122_s28 + $0x40] sm:$0xff] (!%p1517_p7)   ;;  %v1973_v3 = vld [vmem:[%s2122_s28 + $0x48] sm:$0xff] (!%p1517_p7)   ;;  %v1975_v5 = vld [vmem:[%s2122_s28 + $0x50] sm:$0xff] (!%p1517_p7)   ;;  %vm623_vm1 = vcmask (!%p1517_p7), 31744  }
  0x19   : > { %362 = sbr.rel (%p1517_p7) target bundleno = 285 (0x11d), region = 48  ;;  %v1972_v2 = vld [vmem:[%s2122_s28] sm:$0xff] (!%p1517_p7)   ;;  %1766 = vmatprep.subr.bf16.mxu0 (!%p1517_p7), %v1971_v1  ;;  %1896 = vmatprep.subr.bf16.mxu1 (!%p1517_p7), %v1971_v1  ;;  %v1974_v4 = vld [vmem:[%s2122_s28 + $0x8] sm:$0xff] (!%p1517_p7)   ;;  %v1976_v6 = vld [vmem:[%s2122_s28 + $0x10] sm:$0xff] (!%p1517_p7)  }
  0x1a   : > { %1767 = vmatpush3.bf16.msra.mxu0 (!%p1517_p7), %v1972_v2  ;;  %1904 = vmatpush3.bf16.msra.mxu1 (!%p1517_p7), %v1972_v2  ;;  %v1977_v7 = vld [vmem:[%s2122_s28 + $0x58] sm:$0xff] (!%p1517_p7)   ;;  %v1979_v9 = vld [vmem:[%s2122_s28 + $0x60] sm:$0xff] (!%p1517_p7)   ;;  %v1981_v11 = vld [vmem:[%s2122_s28 + $0x68] sm:$0xff] (!%p1517_p7)  }
  0x1b   : > { %1768 = vmatprep.subr.bf16.mxu0 (!%p1517_p7), %v1973_v3  ;;  %1897 = vmatprep.subr.bf16.mxu1 (!%p1517_p7), %v1973_v3  ;;  %v1978_v8 = vld [vmem:[%s2122_s28 + $0x18] sm:$0xff] (!%p1517_p7)   ;;  %v1980_v10 = vld [vmem:[%s2122_s28 + $0x20] sm:$0xff] (!%p1517_p7)   ;;  %v1982_v14 = vld [vmem:[%s2122_s28 + $0x28] sm:$0xff] (!%p1517_p7)  }
  0x1c   : > { %v1989_v12 = vld [vmem:[%s2302_s1 + $0x4] ss:$8 sps:$4 sm:$0xff] (!%p1517_p7)   ;;  %v1983_v15 = vld [vmem:[%s2122_s28 + $0x70] sm:$0xff] (!%p1517_p7)   ;;  %v1985_v17 = vld [vmem:[%s2122_s28 + $0x78] sm:$0xff] (!%p1517_p7)  }
  0x1d   : > { %v1992_v13 = vld [vmem:[%s2302_s1 + $0x24] ss:$8 sps:$4 sm:$0xff] (!%p1517_p7)   ;;  %582 = vmatprep.mubr.bf16.mxu0 (!%p1517_p7), %v1989_v12  ;;  %v1984_v16 = vld [vmem:[%s2122_s28 + $0x30] sm:$0xff] (!%p1517_p7)   ;;  %v1986_v18 = vld [vmem:[%s2122_s28 + $0x38] sm:$0xff] (!%p1517_p7)  }
  0x1e   : > { %1769 = vmatpush3.bf16.msra.mxu0 (!%p1517_p7), %v1974_v4  ;;  %1905 = vmatpush3.bf16.msra.mxu1 (!%p1517_p7), %v1974_v4  ;;  %v1987_v19 = vld [vmem:[%s2302_s1] ss:$8 sps:$4 sm:$0xff] (!%p1517_p7)   ;;  %v1993_v21 = vld [vmem:[%s2302_s1 + $0x14] ss:$8 sps:$4 sm:$0xff] (!%p1517_p7)   ;;  %v1997_v23 = vld [vmem:[%s2302_s1 + $0x10] ss:$8 sps:$4 sm:$0xff] (!%p1517_p7)  }
  0x1f   : > { %1770 = vmatprep.subr.bf16.mxu0 (!%p1517_p7), %v1975_v5  ;;  %1898 = vmatprep.subr.bf16.mxu1 (!%p1517_p7), %v1975_v5  ;;  %v1990_v20 = vld [vmem:[%s2302_s1 + $0x20] ss:$8 sps:$4 sm:$0xff] (!%p1517_p7)   ;;  %v1995_v22 = vld [vmem:[%s2302_s1 + $0x34] ss:$8 sps:$4 sm:$0xff] (!%p1517_p7)   ;;  %v1998_v24 = vld [vmem:[%s2302_s1 + $0x30] ss:$8 sps:$4 sm:$0xff] (!%p1517_p7)  }
  0x20   : > { %598 = vmatprep.mubr.bf16.mxu1 %v1992_v13  ;;  %v363_v27 = vld [vmem:[#allocation2] sm:$0xff]  ;;  %v364_v35 = vld [vmem:[#allocation2 + $0x8] sm:$0xff]  ;;  %v365_v47 = vld [vmem:[#allocation2 + $0x10] sm:$0xff] }
  0x21   : > { %v367_v29 = vld [vmem:[#allocation2 + $0x20] sm:$0xff]  ;;  %v368_v37 = vld [vmem:[#allocation2 + $0x28] sm:$0xff]  ;;  %v369_v49 = vld [vmem:[#allocation2 + $0x30] sm:$0xff] }
  0x22   : > { %1771 = vmatpush3.bf16.msra.mxu0 %v1976_v6  ;;  %1906 = vmatpush3.bf16.msra.mxu1 %v1976_v6  ;;  %v366_v55 = vld [vmem:[#allocation2 + $0x18] sm:$0xff] }
  0x23   : > { %1772 = vmatprep.subr.bf16.mxu0 %v1977_v7  ;;  %1899 = vmatprep.subr.bf16.mxu1 %v1977_v7  ;;  %v370_v57 = vld [vmem:[#allocation2 + $0x38] sm:$0xff] }
  0x26   : > { %1773 = vmatpush3.bf16.msra.mxu0 %v1978_v8  ;;  %1907 = vmatpush3.bf16.msra.mxu1 %v1978_v8 }
  0x27   : > { %1774 = vmatprep.subr.bf16.mxu0 %v1979_v9  ;;  %1900 = vmatprep.subr.bf16.mxu1 %v1979_v9 }
  0x2a   : > { %1775 = vmatpush3.bf16.msra.mxu0 %v1980_v10  ;;  %1908 = vmatpush3.bf16.msra.mxu1 %v1980_v10 }
  0x2b   : > { %1776 = vmatprep.subr.bf16.mxu0 %v1981_v11  ;;  %1901 = vmatprep.subr.bf16.mxu1 %v1981_v11 }
  0x2e   : > { %1777 = vmatpush3.bf16.msra.mxu0 %v1982_v14  ;;  %1909 = vmatpush3.bf16.msra.mxu1 %v1982_v14 }
  0x2f   : > { %1778 = vmatprep.subr.bf16.mxu0 %v1983_v15  ;;  %1902 = vmatprep.subr.bf16.mxu1 %v1983_v15 }
  0x32   : > { %1779 = vmatpush3.bf16.msra.mxu0 %v1984_v16  ;;  %1910 = vmatpush3.bf16.msra.mxu1 %v1984_v16 }
  0x33   : > { %1780 = vmatprep.subr.bf16.mxu0 %v1985_v17  ;;  %1903 = vmatprep.subr.bf16.mxu1 %v1985_v17 }
  0x36   : > { %1781 = vmatpush3.bf16.msra.mxu0 %v1986_v18  ;;  %1911 = vmatpush3.bf16.msra.mxu1 %v1986_v18 }
  0x39   : > { %583 = vmatmul.mubr.bf16.vlgmr.msra.gmra.mrb[0].mxu0 %v1987_v19  ;;  %599 = vmatmul.mubr.bf16.vlgmr.msra.gmra.mrb[0].mxu1 %v1990_v20 }
  0x3a   : > { %590 = vmatprep.mubr.bf16.mxu0 %v1993_v21  ;;  %606 = vmatprep.mubr.bf16.mxu1 %v1995_v22 }
  0x41   : > { %591 = vmatmul.mubr.bf16.gmra.mrb[4].mxu0 %v1997_v23  ;;  %607 = vmatmul.mubr.bf16.gmra.mrb[4].mxu1 %v1998_v24 }
 0x10c   : > { %v1782_v25 = vpop.f32.mrb[0].mxu0  ;;  %v1794_v26 = vpop.f32.mrb[0].mxu1 }
 0x10d   : > { %v1783_v28 = vpop.f32.mrb[1].mxu0  ;;  %v1795_v30 = vpop.f32.mrb[1].mxu1 }
 0x10e   : > { %v1784_v31 = vadd.f32 %v1783_v28, %v1782_v25  ;;  %v1796_v32 = vadd.f32 %v1795_v30, %v1794_v26  ;;  %v1785_v33 = vpop.f32.mrb[2].mxu0  ;;  %v1797_v34 = vpop.f32.mrb[2].mxu1 }
 0x10f   : > { %v1786_v36 = vpop.f32.mrb[3].mxu0  ;;  %v1798_v38 = vpop.f32.mrb[3].mxu1 }
 0x110   : > { %v615_v39 = vadd.f32 %v1784_v31, %v363_v27  ;;  %v619_v40 = vadd.f32 %v1796_v32, %v367_v29  ;;  %v1787_v41 = vadd.f32 %v1786_v36, %v1785_v33  ;;  %v1799_v42 = vadd.f32 %v1798_v38, %v1797_v34 }
 0x112   : > { %624 = vst.msk [vmem:[#allocation2] sm:$0xff] %vm623_vm1, %v615_v39  ;;  %628 = vst.msk [vmem:[#allocation2 + $0x20] sm:$0xff] %vm623_vm1, %v619_v40  ;;  %v616_v43 = vadd.f32 %v1787_v41, %v364_v35  ;;  %v620_v44 = vadd.f32 %v1799_v42, %v368_v37 }
 0x114   : > { %625 = vst.msk [vmem:[#allocation2 + $0x8] sm:$0xff] %vm623_vm1, %v616_v43  ;;  %629 = vst.msk [vmem:[#allocation2 + $0x28] sm:$0xff] %vm623_vm1, %v620_v44  ;;  %v1788_v45 = vpop.f32.mrb[4].mxu0  ;;  %v1800_v46 = vpop.f32.mrb[4].mxu1 }
 0x115   : > { %v1789_v48 = vpop.f32.mrb[5].mxu0  ;;  %v1801_v50 = vpop.f32.mrb[5].mxu1 }
 0x116   : > { %v1790_v51 = vadd.f32 %v1789_v48, %v1788_v45  ;;  %v1802_v52 = vadd.f32 %v1801_v50, %v1800_v46  ;;  %v1791_v53 = vpop.f32.mrb[6].mxu0  ;;  %v1803_v54 = vpop.f32.mrb[6].mxu1 }
 0x117   : > { %v1792_v56 = vpop.f32.mrb[7].mxu0  ;;  %v1804_v58 = vpop.f32.mrb[7].mxu1 }
 0x118   : > { %v617_v59 = vadd.f32 %v1790_v51, %v365_v47  ;;  %v621_v60 = vadd.f32 %v1802_v52, %v369_v49  ;;  %v1793_v61 = vadd.f32 %v1792_v56, %v1791_v53  ;;  %v1805_v62 = vadd.f32 %v1804_v58, %v1803_v54 }
 0x11a   : > { %626 = vst.msk [vmem:[#allocation2 + $0x10] sm:$0xff] %vm623_vm1, %v617_v59  ;;  %630 = vst.msk [vmem:[#allocation2 + $0x30] sm:$0xff] %vm623_vm1, %v621_v60  ;;  %v618_v63 = vadd.f32 %v1793_v61, %v366_v55  ;;  %v622_v0 = vadd.f32 %v1805_v62, %v370_v57 }
 0x11c   : > { %627 = vst.msk [vmem:[#allocation2 + $0x18] sm:$0xff] %vm623_vm1, %v618_v63  ;;  %631 = vst.msk [vmem:[#allocation2 + $0x38] sm:$0xff] %vm623_vm1, %v622_v0 }
 0x11d PF: > { %633 = sbr.rel (!%p345_p6) target bundleno = 532 (0x214), region = 52  ;;  %v666_v1 = vld [vmem:[%s2304_s3] sm:$0x3] (%p345_p6)  ;;  %vm680_vm2 = vcmask (%p345_p6), 1041408   ;;  %v635_v3 = vld [vmem:[#allocation2 + $0x8] sm:$0xff] (%p345_p6)  ;;  %vm667_vm3 = vcmask (%p345_p6), 31744  }
 0x11e   : > { %v634_v2 = vld [vmem:[#allocation2] sm:$0xff] (%p345_p6)  ;;  %1929 = vmatprep.subr.msk.bf16.mxu0 (%p345_p6), %vm680_vm2, %v666_v1  ;;  %v682_v4 = vsel (%p345_p6), %vm680_vm2, %v666_v1, 0  ;;  %1928 = vmatprep.subr.msk.bf16.mxu1 (%p345_p6), %vm680_vm2, %v666_v1  ;;  %v639_v10 = vld [vmem:[#allocation2 + $0x28] sm:$0xff] (%p345_p6) }
 0x11f   : > { %v642_v5 = vpack.c.bf16 (%p345_p6), %v635_v3, %v634_v2  ;;  %v638_v8 = vld [vmem:[#allocation2 + $0x20] sm:$0xff] (%p345_p6)  ;;  %1847 = vmatpush3.bf16.msra.mxu0 (%p345_p6), %v682_v4  ;;  %1837 = vmatpush3.bf16.msra.mxu1 (%p345_p6), %v682_v4  ;;  %v1748_v40 = vld [vmem:[%s2305_s4 + $0x8] sm:$0xff] (%p345_p6)  }
 0x120   : > { %v644_v15 = vpack.c.bf16 (%p345_p6), %v639_v10, %v638_v8  ;;  %v1653_v43 = vld [vmem:[%s2305_s4] sm:$0xff] (%p345_p6)   ;;  %v1658_v47 = vunpack.c.l.bf16 (%p345_p6), %v1748_v40  ;;  %v1659_v49 = vunpack.c.h.bf16 (%p345_p6), %v1748_v40 }
 0x121   : > { %v636_v6 = vld [vmem:[#allocation2 + $0x10] sm:$0xff] (%p345_p6)  ;;  %1848 = vmatprep.mubr.msk.bf16.mxu0 (%p345_p6), %vm667_vm3, %v642_v5  ;;  %v646_v13 = vunpack.c.l.bf16 (%p345_p6), %v642_v5  ;;  %v647_v14 = vunpack.c.h.bf16 (%p345_p6), %v642_v5  ;;  %v1654_v53 = vunpack.c.l.bf16 (%p345_p6), %v1653_v43  ;;  %v1655_v55 = vunpack.c.h.bf16 (%p345_p6), %v1653_v43 }
 0x122   : > { %v640_v11 = vld [vmem:[#allocation2 + $0x30] sm:$0xff] (%p345_p6)  ;;  %v650_v21 = vunpack.c.l.bf16 (%p345_p6), %v644_v15  ;;  %v651_v22 = vunpack.c.h.bf16 (%p345_p6), %v644_v15 }
 0x123   : > { %v637_v7 = vld [vmem:[#allocation2 + $0x18] sm:$0xff] (%p345_p6)  ;;  %v654_v19 = vsub.f32 (%p345_p6), %v634_v2, %v646_v13  ;;  %v655_v20 = vsub.f32 (%p345_p6), %v635_v3, %v647_v14 }
 0x124   : > { %v643_v9 = vpack.c.bf16 %v637_v7, %v636_v6  ;;  %v641_v12 = vld [vmem:[#allocation2 + $0x38] sm:$0xff]  ;;  %v658_v28 = vsub.f32 %v638_v8, %v650_v21  ;;  %v659_v29 = vsub.f32 %v639_v10, %v651_v22 }
 0x125   : > { %v645_v16 = vpack.c.bf16 %v641_v12, %v640_v11  ;;  %v662_v27 = vpack.c.bf16 %v655_v20, %v654_v19  ;;  %v1750_v2 = vld [vmem:[%s2305_s4 + $0x18] sm:$0xff]  }
 0x126   : > { %v648_v17 = vunpack.c.l.bf16 %v643_v9  ;;  %v649_v18 = vunpack.c.h.bf16 %v643_v9  ;;  %1849 = vmatmul.mubr.msk.bf16.vlgmr.msra.gmra.mrb[0].mxu0 %vm667_vm3, %v643_v9  ;;  %v664_v31 = vpack.c.bf16 %v659_v29, %v658_v28  ;;  %v1667_v13 = vunpack.c.h.bf16 %v1750_v2 }
 0x127   : > { %1852 = vmatprep.mubr.msk.bf16.mxu0 %vm667_vm3, %v644_v15  ;;  %v652_v25 = vunpack.c.l.bf16 %v645_v16  ;;  %v653_v26 = vunpack.c.h.bf16 %v645_v16  ;;  %1838 = vmatprep.mubr.msk.bf16.mxu1 %vm667_vm3, %v662_v27 }
 0x128   : > { %v656_v23 = vsub.f32 %v636_v6, %v648_v17  ;;  %v657_v24 = vsub.f32 %v637_v7, %v649_v18  ;;  %v1749_v6 = vld [vmem:[%s2305_s4 + $0x10] sm:$0xff]  }
 0x129   : > { %v660_v32 = vsub.f32 %v640_v11, %v652_v25  ;;  %v661_v33 = vsub.f32 %v641_v12, %v653_v26  ;;  %v1666_v11 = vunpack.c.l.bf16 %v1750_v2  ;;  %v1663_v18 = vunpack.c.h.bf16 %v1749_v6 }
 0x12a   : > { %v663_v30 = vpack.c.bf16 %v657_v24, %v656_v23 }
 0x12b   : > { %v665_v34 = vpack.c.bf16 %v661_v33, %v660_v32 }
 0x12c   : > { %1839 = vmatmul.mubr.msk.bf16.vlgmr.msra.gmra.mrb[0].mxu1 %vm667_vm3, %v663_v30 }
 0x12d   : > { %1842 = vmatprep.mubr.msk.bf16.mxu1 %vm667_vm3, %v664_v31 }
 0x12e   : > { %1853 = vmatmul.mubr.msk.bf16.gmra.mrb[4].mxu0 %vm667_vm3, %v645_v16  ;;  %v1662_v16 = vunpack.c.l.bf16 %v1749_v6 }
 0x134   : > { %1843 = vmatmul.mubr.msk.bf16.gmra.mrb[4].mxu1 %vm667_vm3, %v665_v34 }
 0x1f9   : > { %v1850_v35 = vpop.f32.mrb[0].mxu0 }
 0x1fa   : > { %v795_v36 = vpop.f32.mrb[1].mxu0 }
 0x1fb   : > { %v1851_v37 = vpop.f32.mrb[2].mxu0 }
 0x1fc   : > { %v798_v38 = vpop.f32.mrb[3].mxu0 }
 0x1ff   : > { %v1840_v39 = vpop.f32.mrb[0].mxu1 }
 0x200   : > { %v804_v41 = vadd.f32 %v1850_v35, %v1840_v39  ;;  %v718_v42 = vpop.f32.mrb[1].mxu1 }
 0x201   : > { %v796_v44 = vadd.f32 %v795_v36, %v718_v42  ;;  %v1841_v45 = vpop.f32.mrb[2].mxu1  ;;  %v1854_v51 = vpop.f32.mrb[4].mxu0 }
 0x202   : > { %v828_v46 = vmax.f32 %v804_v41, 0.0  ;;  %v807_v48 = vadd.f32 %v1851_v37, %v1841_v45  ;;  %v721_v50 = vpop.f32.mrb[3].mxu1  ;;  %v811_v56 = vpop.f32.mrb[5].mxu0 }
 0x203   : > { %v826_v52 = vmax.f32 %v796_v44, 0.0  ;;  %v799_v54 = vadd.f32 %v798_v38, %v721_v50  ;;  %v1855_v58 = vpop.f32.mrb[6].mxu0 }
 0x204   : > { %v829_v57 = vmax.f32 %v807_v48, 0.0  ;;  %v814_v60 = vpop.f32.mrb[7].mxu0  ;;  %v852_v61 = vmul.f32 %v1658_v47, %v828_v46 }
 0x205   : > { %v827_v59 = vmax.f32 %v799_v54, 0.0  ;;  %v850_v63 = vmul.f32 %v1654_v53, %v826_v52 }
 0x206   : > { %v853_v62 = vmul.f32 %v1659_v49, %v829_v57 }
 0x207   : > { %v851_v0 = vmul.f32 %v1655_v55, %v827_v59  ;;  %v1844_v1 = vpop.f32.mrb[4].mxu1 }
 0x208   : > { %v859_v3 = vpack.c.bf16 %v853_v62, %v852_v61  ;;  %v820_v4 = vadd.f32 %v1854_v51, %v1844_v1  ;;  %v734_v5 = vpop.f32.mrb[5].mxu1 }
 0x209   : > { %v858_v7 = vpack.c.bf16 %v851_v0, %v850_v63  ;;  %v812_v8 = vadd.f32 %v811_v56, %v734_v5  ;;  %v1845_v9 = vpop.f32.mrb[6].mxu1 }
 0x20a   : > { %863 = vst [vmem:[#allocation3 + $0x8] sm:$0xff] %v859_v3  ;;  %v832_v10 = vmax.f32 %v820_v4, 0.0  ;;  %v823_v12 = vadd.f32 %v1855_v58, %v1845_v9  ;;  %v737_v14 = vpop.f32.mrb[7].mxu1 }
 0x20b   : > { %862 = vst [vmem:[#allocation3] sm:$0xff] %v858_v7  ;;  %v830_v15 = vmax.f32 %v812_v8, 0.0  ;;  %v815_v17 = vadd.f32 %v814_v60, %v737_v14 }
 0x20c   : > { %v833_v19 = vmax.f32 %v823_v12, 0.0  ;;  %v856_v21 = vmul.f32 %v1666_v11, %v832_v10 }
 0x20d   : > { %v831_v20 = vmax.f32 %v815_v17, 0.0  ;;  %v854_v23 = vmul.f32 %v1662_v16, %v830_v15 }
 0x20e   : > { %v857_v22 = vmul.f32 %v1667_v13, %v833_v19 }
 0x20f   : > { %v855_v24 = vmul.f32 %v1663_v18, %v831_v20 }
 0x210   : > { %v861_v25 = vpack.c.bf16 %v857_v22, %v856_v21 }
 0x211   : > { %v860_v26 = vpack.c.bf16 %v855_v24, %v854_v23 }
 0x212   : > { %865 = vst [vmem:[#allocation3 + $0x18] sm:$0xff] %v861_v25 }
 0x213   : > { %864 = vst [vmem:[#allocation3 + $0x10] sm:$0xff] %v860_v26 }
 0x214 PF: > { %p1550_p8 = scmp.ne.s32.totalorder %s2037_s18, 1 }
 0x215   : > { %v905_v27 = vld [vmem:[#allocation3] sm:$0xff] (!%p1550_p8)  ;;  %v906_v28 = vld [vmem:[#allocation3 + $0x8] sm:$0xff] (!%p1550_p8)  ;;  %vm989_vm4 = vcmask (!%p1550_p8), 523264   ;;  %v2003_v35 = vld [vmem:[%s2303_s2 + $0x10] sm:$0xff] (!%p1550_p8)  }
 0x216   : > { %869 = sbr.rel (%p1550_p8) target bundleno = 792 (0x318), region = 56  ;;  %1856 = vmatprep.subr.bf16.mxu0 (!%p1550_p8), %v905_v27  ;;  %1920 = vmatprep.subr.bf16.mxu1 (!%p1550_p8), %v905_v27  ;;  %v1999_v29 = vld [vmem:[%s2303_s2] sm:$0xff] (!%p1550_p8)   ;;  %v2001_v33 = vld [vmem:[%s2303_s2 + $0x8] sm:$0xff] (!%p1550_p8)   ;;  %v2004_v36 = vld [vmem:[%s2303_s2 + $0x50] sm:$0xff] (!%p1550_p8)  }
 0x217   : > { %1857 = vmatpush3.bf16.msra.mxu0 (!%p1550_p8), %v905_v27  ;;  %1924 = vmatpush3.bf16.msra.mxu1 (!%p1550_p8), %v905_v27  ;;  %v2000_v30 = vld [vmem:[%s2303_s2 + $0x40] sm:$0xff] (!%p1550_p8)   ;;  %v2002_v34 = vld [vmem:[%s2303_s2 + $0x48] sm:$0xff] (!%p1550_p8)   ;;  %v2005_v37 = vld [vmem:[%s2303_s2 + $0x18] sm:$0xff] (!%p1550_p8)  }
 0x218   : > { %1858 = vmatprep.subr.bf16.mxu0 (!%p1550_p8), %v906_v28  ;;  %1921 = vmatprep.subr.bf16.mxu1 (!%p1550_p8), %v906_v28  ;;  %v2006_v38 = vld [vmem:[%s2303_s2 + $0x58] sm:$0xff] (!%p1550_p8)   ;;  %v2007_v39 = vld [vmem:[%s2303_s2 + $0x20] sm:$0xff] (!%p1550_p8)   ;;  %v2009_v41 = vld [vmem:[%s2303_s2 + $0x28] sm:$0xff] (!%p1550_p8)  }
 0x219   : > { %1864 = vmatprep.mubr.msk.bf16.mxu0 (!%p1550_p8), %vm989_vm4, %v1999_v29  ;;  %1880 = vmatprep.mubr.msk.bf16.mxu1 (!%p1550_p8), %vm989_vm4, %v2000_v30  ;;  %v908_v32 = vld [vmem:[#allocation3 + $0x18] sm:$0xff] (!%p1550_p8)  ;;  %v2008_v40 = vld [vmem:[%s2303_s2 + $0x60] sm:$0xff] (!%p1550_p8)   ;;  %v2010_v42 = vld [vmem:[%s2303_s2 + $0x68] sm:$0xff] (!%p1550_p8)  }
 0x21a   : > { %v907_v31 = vld [vmem:[#allocation3 + $0x10] sm:$0xff] (!%p1550_p8)  ;;  %v2013_v45 = vld [vmem:[%s2303_s2 + $0x38] sm:$0xff] (!%p1550_p8)  }
 0x21b   : > { %1859 = vmatpush3.bf16.msra.mxu0 (!%p1550_p8), %v906_v28  ;;  %1925 = vmatpush3.bf16.msra.mxu1 (!%p1550_p8), %v906_v28  ;;  %v2011_v43 = vld [vmem:[%s2303_s2 + $0x30] sm:$0xff] (!%p1550_p8)   ;;  %v2014_v46 = vld [vmem:[%s2303_s2 + $0x78] sm:$0xff] (!%p1550_p8)  }
 0x21c   : > { %1860 = vmatprep.subr.bf16.mxu0 (!%p1550_p8), %v907_v31  ;;  %1922 = vmatprep.subr.bf16.mxu1 (!%p1550_p8), %v907_v31  ;;  %v2012_v44 = vld [vmem:[%s2303_s2 + $0x70] sm:$0xff] (!%p1550_p8)  }
 0x21f   : > { %1861 = vmatpush3.bf16.msra.mxu0 %v907_v31  ;;  %1926 = vmatpush3.bf16.msra.mxu1 %v907_v31 }
 0x220   : > { %1862 = vmatprep.subr.bf16.mxu0 %v908_v32  ;;  %1923 = vmatprep.subr.bf16.mxu1 %v908_v32 }
 0x223   : > { %1863 = vmatpush3.bf16.msra.mxu0 %v908_v32  ;;  %1927 = vmatpush3.bf16.msra.mxu1 %v908_v32 }
 0x226   : > { %1865 = vmatmul.mubr.msk.bf16.vlgmr.msra.gmra.mrb[0].mxu0 %vm989_vm4, %v2001_v33  ;;  %1881 = vmatmul.mubr.msk.bf16.vlgmr.msra.gmra.mrb[0].mxu1 %vm989_vm4, %v2002_v34 }
 0x227   : > { %1868 = vmatprep.mubr.msk.bf16.mxu0 %vm989_vm4, %v2003_v35  ;;  %1884 = vmatprep.mubr.msk.bf16.mxu1 %vm989_vm4, %v2004_v36 }
 0x22e   : > { %1869 = vmatmul.mubr.msk.bf16.gmra.mrb[4].mxu0 %vm989_vm4, %v2005_v37  ;;  %1885 = vmatmul.mubr.msk.bf16.gmra.mrb[4].mxu1 %vm989_vm4, %v2006_v38 }
 0x22f   : > { %1872 = vmatprep.mubr.msk.bf16.mxu0 %vm989_vm4, %v2007_v39  ;;  %1888 = vmatprep.mubr.msk.bf16.mxu1 %vm989_vm4, %v2008_v40 }
 0x236   : > { %1873 = vmatmul.mubr.msk.bf16.gmra.mrb[8].mxu0 %vm989_vm4, %v2009_v41  ;;  %1889 = vmatmul.mubr.msk.bf16.gmra.mrb[8].mxu1 %vm989_vm4, %v2010_v42 }
 0x237   : > { %1876 = vmatprep.mubr.msk.bf16.mxu0 %vm989_vm4, %v2011_v43  ;;  %1892 = vmatprep.mubr.msk.bf16.mxu1 %vm989_vm4, %v2012_v44 }
 0x23e   : > { %1877 = vmatmul.mubr.msk.bf16.gmra.mrb[12].mxu0 %vm989_vm4, %v2013_v45  ;;  %1893 = vmatmul.mubr.msk.bf16.gmra.mrb[12].mxu1 %vm989_vm4, %v2014_v46 }
 0x2f9   : > { %v1866_v47 = vpop.f32.mrb[0].mxu0  ;;  %v1882_v48 = vpop.f32.mrb[0].mxu1 }
 0x2fa   : > { %v1072_v49 = vpop.f32.mrb[1].mxu0  ;;  %v1136_v50 = vpop.f32.mrb[1].mxu1 }
 0x2fb   : > { %v1867_v51 = vpop.f32.mrb[2].mxu0  ;;  %v1883_v52 = vpop.f32.mrb[2].mxu1 }
 0x2fc   : > { %v1676_v53 = vpack.c.bf16 %v1867_v51, %v1866_v47  ;;  %v1716_v54 = vpack.c.bf16 %v1883_v52, %v1882_v48  ;;  %v1075_v55 = vpop.f32.mrb[3].mxu0  ;;  %v1139_v56 = vpop.f32.mrb[3].mxu1 }
 0x2fd   : > { %v1671_v57 = vpack.c.bf16 %v1075_v55, %v1072_v49  ;;  %v1711_v58 = vpack.c.bf16 %v1139_v56, %v1136_v50 }
 0x2fe   : > { %1751 = vst [vmem:[%s2127_s6 + $0x8] sm:$0xff] %v1676_v53   ;;  %1759 = vst [vmem:[%s2127_s6 + $0x48] sm:$0xff] %v1716_v54  }
 0x2ff   : > { %1672 = vst [vmem:[%s2127_s6] sm:$0xff] %v1671_v57   ;;  %1758 = vst [vmem:[%s2127_s6 + $0x40] sm:$0xff] %v1711_v58  }
 0x301   : > { %v1870_v59 = vpop.f32.mrb[4].mxu0  ;;  %v1886_v60 = vpop.f32.mrb[4].mxu1 }
 0x302   : > { %v1088_v61 = vpop.f32.mrb[5].mxu0  ;;  %v1152_v62 = vpop.f32.mrb[5].mxu1 }
 0x303   : > { %v1871_v63 = vpop.f32.mrb[6].mxu0  ;;  %v1887_v0 = vpop.f32.mrb[6].mxu1 }
 0x304   : > { %v1686_v1 = vpack.c.bf16 %v1871_v63, %v1870_v59  ;;  %v1726_v2 = vpack.c.bf16 %v1887_v0, %v1886_v60  ;;  %v1091_v3 = vpop.f32.mrb[7].mxu0  ;;  %v1155_v4 = vpop.f32.mrb[7].mxu1 }
 0x305   : > { %v1681_v5 = vpack.c.bf16 %v1091_v3, %v1088_v61  ;;  %v1721_v6 = vpack.c.bf16 %v1155_v4, %v1152_v62 }
 0x306   : > { %1753 = vst [vmem:[%s2127_s6 + $0x18] sm:$0xff] %v1686_v1   ;;  %1761 = vst [vmem:[%s2127_s6 + $0x58] sm:$0xff] %v1726_v2  }
 0x307   : > { %1752 = vst [vmem:[%s2127_s6 + $0x10] sm:$0xff] %v1681_v5   ;;  %1760 = vst [vmem:[%s2127_s6 + $0x50] sm:$0xff] %v1721_v6  }
 0x309   : > { %v1874_v7 = vpop.f32.mrb[8].mxu0  ;;  %v1890_v8 = vpop.f32.mrb[8].mxu1 }
 0x30a   : > { %v1104_v9 = vpop.f32.mrb[9].mxu0  ;;  %v1168_v10 = vpop.f32.mrb[9].mxu1 }
 0x30b   : > { %v1875_v11 = vpop.f32.mrb[10].mxu0  ;;  %v1891_v12 = vpop.f32.mrb[10].mxu1 }
 0x30c   : > { %v1696_v13 = vpack.c.bf16 %v1875_v11, %v1874_v7  ;;  %v1736_v14 = vpack.c.bf16 %v1891_v12, %v1890_v8  ;;  %v1107_v15 = vpop.f32.mrb[11].mxu0  ;;  %v1171_v16 = vpop.f32.mrb[11].mxu1 }
 0x30d   : > { %v1691_v17 = vpack.c.bf16 %v1107_v15, %v1104_v9  ;;  %v1731_v18 = vpack.c.bf16 %v1171_v16, %v1168_v10 }
 0x30e   : > { %1755 = vst [vmem:[%s2127_s6 + $0x28] sm:$0xff] %v1696_v13   ;;  %1763 = vst [vmem:[%s2127_s6 + $0x68] sm:$0xff] %v1736_v14  }
 0x30f   : > { %1754 = vst [vmem:[%s2127_s6 + $0x20] sm:$0xff] %v1691_v17   ;;  %1762 = vst [vmem:[%s2127_s6 + $0x60] sm:$0xff] %v1731_v18  }
 0x311   : > { %v1878_v19 = vpop.f32.mrb[12].mxu0  ;;  %v1894_v20 = vpop.f32.mrb[12].mxu1 }
 0x312   : > { %v1120_v21 = vpop.f32.mrb[13].mxu0  ;;  %v1184_v22 = vpop.f32.mrb[13].mxu1 }
 0x313   : > { %v1879_v23 = vpop.f32.mrb[14].mxu0  ;;  %v1895_v24 = vpop.f32.mrb[14].mxu1 }
 0x314   : > { %v1706_v25 = vpack.c.bf16 %v1879_v23, %v1878_v19  ;;  %v1746_v26 = vpack.c.bf16 %v1895_v24, %v1894_v20  ;;  %v1123_v27 = vpop.f32.mrb[15].mxu0  ;;  %v1187_v28 = vpop.f32.mrb[15].mxu1 }
 0x315   : > { %v1701_v29 = vpack.c.bf16 %v1123_v27, %v1120_v21  ;;  %v1741_v30 = vpack.c.bf16 %v1187_v28, %v1184_v22 }
 0x316   : > { %1757 = vst [vmem:[%s2127_s6 + $0x38] sm:$0xff] %v1706_v25   ;;  %1765 = vst [vmem:[%s2127_s6 + $0x78] sm:$0xff] %v1746_v26  }
 0x317   : > { %1756 = vst [vmem:[%s2127_s6 + $0x30] sm:$0xff] %v1701_v29   ;;  %1764 = vst [vmem:[%s2127_s6 + $0x70] sm:$0xff] %v1741_v30  }
 0x318 PF: > { %s15_s22 = sadd.s32 1, %s2053_s22   ;;  %s2307_s18 = smov %s2045_s20 }
 0x319   : > { %p12_p9 = scmp.ge.s32.totalorder %s15_s22, 6   ;;  %s2308_s19 = smov %s2049_s21 }
 0x31a   : > { %s2309_s20 = smov %s2312_s23  ;;  %s2310_s21 = smov %s2316_s24 }
 0x31b   :  { %14 = sbr.rel (!%p12_p9) target bundleno = 3 (0x3), region = 94 }

</bundles_post_ra>
